<compile_context>
chip_gen: v7x
topology: tpu7x:2x2x1
jax: 0.10.0
libtpu: 0.0.40
codegen_flags: <defaults>
</compile_context>

<pallas_src>
import jax
import jax.numpy as jnp
from jax.experimental import pallas as pl
from jax.experimental.pallas import tpu as pltpu


def _cross_attention_kernel(xt_ref, xd_ref,
                            wt3_ref, wd3_ref,
                            wout_t_ref, wout_d_ref, bout_ref,
                            o_ref):
    """One batch tile per grid step.

    xt_ref, xd_ref : (TB, S, H)  input tiles (compute dtype)
    wt3_ref, wd3_ref : (H, 3H)   fused [Q|K|V] weights, (in, out) layout
    wout_t_ref, wout_d_ref : (H, H) halves of the output projection weight
    bout_ref : (1, H) f32 output bias
    o_ref    : (TB, S, H) f32 output tile
    """
    TB, S, H = xt_ref.shape
    cdtype = wt3_ref.dtype

    xt = xt_ref[...].reshape(TB * S, H)
    xd = xd_ref[...].reshape(TB * S, H)

    # Fused QKV projections: one (TB*S, H) @ (H, 3H) MXU matmul per stream.
    proj_t = jnp.dot(xt, wt3_ref[...], preferred_element_type=jnp.float32)
    proj_d = jnp.dot(xd, wd3_ref[...], preferred_element_type=jnp.float32)

    def split_qkv(p):
        q = p[:, 0 * H:1 * H].reshape(TB, S, H).astype(cdtype)
        k = p[:, 1 * H:2 * H].reshape(TB, S, H).astype(cdtype)
        v = p[:, 2 * H:3 * H].reshape(TB, S, H).astype(cdtype)
        return q, k, v

    q_t, k_t, v_t = split_qkv(proj_t)
    q_d, k_d, v_d = split_qkv(proj_d)

    # Cross-attention logits: batched contraction on the hidden dim (no explicit .T).
    logits_t = jnp.einsum("bqh,bkh->bqk", q_d, k_t,
                          preferred_element_type=jnp.float32)   # (TB, S, S)
    logits_d = jnp.einsum("bqh,bkh->bqk", q_t, k_d,
                          preferred_element_type=jnp.float32)

    def softmax_lastdim(a):
        m = jnp.max(a, axis=-1, keepdims=True)
        e = jnp.exp(a - m)
        return e * pl.reciprocal(jnp.sum(e, axis=-1, keepdims=True), approx=True)

    p_t = softmax_lastdim(logits_t).astype(cdtype)
    p_d = softmax_lastdim(logits_d).astype(cdtype)

    out_t = jnp.einsum("bqk,bkh->bqh", p_t, v_t,
                       preferred_element_type=jnp.float32)      # (TB, S, H)
    out_d = jnp.einsum("bqk,bkh->bqh", p_d, v_d,
                       preferred_element_type=jnp.float32)

    # Output projection without the lane-axis concat:
    #   concat(out_t, out_d) @ W == out_t @ W[:H] + out_d @ W[H:]
    out = (jnp.dot(out_t.reshape(TB * S, H).astype(cdtype), wout_t_ref[...],
                   preferred_element_type=jnp.float32)
           + jnp.dot(out_d.reshape(TB * S, H).astype(cdtype), wout_d_ref[...],
                     preferred_element_type=jnp.float32)
           + bout_ref[...])
    o_ref[...] = out.reshape(TB, S, H).astype(o_ref.dtype)


def _vmem_limit_bytes(tb, s, h, in_bytes):
    # double-buffered I/O tiles + resident weights + f32 intermediates, with headroom;
    # clamp to 64 MiB so the hint stays valid on v7x (64 MiB physical VMEM per TC).
    io = 2 * (2 * tb * s * h * in_bytes) + 2 * (tb * s * h * 4)
    weights = (2 * 3 * h * h + 2 * h * h + h) * in_bytes + h * 4
    interm = 4 * (2 * tb * s * 3 * h + 8 * tb * s * h + 4 * tb * s * s)
    need = io + weights + interm
    return int(min(max(2 * need, 8 << 20), 64 << 20))


def cross_attention_pallas(inputs_t, inputs_d, params, *,
                           batch_tile=None, compute_dtype=jnp.float32):
    """inputs_t, inputs_d: (S, B, H) float32; returns (S, B, H) float32."""
    if inputs_d is None:            # torch module's single-input mode
        inputs_d = inputs_t
    S, B, H = inputs_t.shape

    # Batch tiling: default to 2 grid steps when the batch splits evenly
    # (both TensorCores on v7x; neutral on single-TC v5e/v6e).
    if batch_tile is None:
        batch_tile = B // 2 if (B >= 2 and B % 2 == 0) else B
    assert B % batch_tile == 0, "batch_tile must divide batch"
    nb = B // batch_tile

    # Move to kernel layout (B, S, H).  (Wrapper-side transposes: one HBM pass each;
    # kept for torch API parity.)
    xt = jnp.transpose(inputs_t, (1, 0, 2)).astype(compute_dtype)
    xd = jnp.transpose(inputs_d, (1, 0, 2)).astype(compute_dtype)

    # torch Linear computes y = x @ W^T; pre-transpose to (in, out) and fuse Q|K|V.
    wt3 = jnp.concatenate(
        [params["t_Q"].T, params["t_K"].T, params["t_V"].T], axis=1).astype(compute_dtype)
    wd3 = jnp.concatenate(
        [params["d_Q"].T, params["d_K"].T, params["d_V"].T], axis=1).astype(compute_dtype)
    wout = params["out_w"].T                      # (2H, H)
    wout_t = wout[:H].astype(compute_dtype)       # acts on out_t
    wout_d = wout[H:].astype(compute_dtype)       # acts on out_d
    bout = params["out_b"].reshape(1, H).astype(jnp.float32)

    in_bytes = jnp.dtype(compute_dtype).itemsize
    flops = 16 * B * S * H * H + 8 * B * S * S * H
    bytes_accessed = in_bytes * (2 * B * S * H + 8 * H * H) + 4 * (B * S * H + H)
    cost = pl.CostEstimate(flops=flops,
                           transcendentals=2 * B * S * S,
                           bytes_accessed=bytes_accessed)

    out = pl.pallas_call(
        _cross_attention_kernel,
        out_shape=jax.ShapeDtypeStruct((B, S, H), jnp.float32),
        grid_spec=pltpu.PrefetchScalarGridSpec(
            num_scalar_prefetch=0,
            grid=(nb,),
            in_specs=[
                pl.BlockSpec((batch_tile, S, H), lambda b: (b, 0, 0)),   # x_t tile
                pl.BlockSpec((batch_tile, S, H), lambda b: (b, 0, 0)),   # x_d tile
                pl.BlockSpec((H, 3 * H), lambda b: (0, 0)),              # fused t QKV
                pl.BlockSpec((H, 3 * H), lambda b: (0, 0)),              # fused d QKV
                pl.BlockSpec((H, H), lambda b: (0, 0)),                  # out W (t half)
                pl.BlockSpec((H, H), lambda b: (0, 0)),                  # out W (d half)
                pl.BlockSpec((1, H), lambda b: (0, 0)),                  # out bias
            ],
            out_specs=pl.BlockSpec((batch_tile, S, H), lambda b: (b, 0, 0)),
        ),
        compiler_params=pltpu.CompilerParams(
            dimension_semantics=("parallel",),
            vmem_limit_bytes=_vmem_limit_bytes(batch_tile, S, H, in_bytes),
        ),
        cost_estimate=cost,
    )(xt, xd, wt3, wd3, wout_t, wout_d, bout)

    # Back to torch convention (S, B, H).
    return jnp.transpose(out, (1, 0, 2))


def cross_attention_reference(inputs_t, inputs_d, params):
    """Pure-JAX reference mirroring the PyTorch forward exactly (f32 everywhere)."""
    if inputs_d is None:
        inputs_d = inputs_t
    xt = jnp.transpose(inputs_t, (1, 0, 2))   # (B, S, H)
    xd = jnp.transpose(inputs_d, (1, 0, 2))
    q_t = xt @ params["t_Q"].T
    k_t = xt @ params["t_K"].T
    v_t = xt @ params["t_V"].T
    q_d = xd @ params["d_Q"].T
    k_d = xd @ params["d_K"].T
    v_d = xd @ params["d_V"].T
    alpha_t = jax.nn.softmax(jnp.einsum("bqh,bkh->bqk", q_d, k_t), axis=-1)
    alpha_d = jax.nn.softmax(jnp.einsum("bqh,bkh->bqk", q_t, k_d), axis=-1)
    out_t = jnp.einsum("bqk,bkh->bqh", alpha_t, v_t)
    out_d = jnp.einsum("bqk,bkh->bqh", alpha_d, v_d)
    cat = jnp.concatenate([out_t, out_d], axis=-1)       # (B, S, 2H)
    cat = jnp.transpose(cat, (1, 0, 2))                  # (S, B, 2H)
    return cat @ params["out_w"].T + params["out_b"]


def init_params(key, hidden_dim):
    """Deterministic init, mimicking torch.nn.Linear's uniform(-1/sqrt(in), 1/sqrt(in))."""
    ks = jax.random.split(key, 8)
    h = hidden_dim
    bound_h = 1.0 / jnp.sqrt(h)
    bound_2h = 1.0 / jnp.sqrt(2 * h)
    u = lambda k, shape, b: jax.random.uniform(k, shape, jnp.float32, -b, b)
    return {
        "t_Q": u(ks[0], (h, h), bound_h),
        "t_K": u(ks[1], (h, h), bound_h),
        "t_V": u(ks[2], (h, h), bound_h),
        "d_Q": u(ks[3], (h, h), bound_h),
        "d_K": u(ks[4], (h, h), bound_h),
        "d_V": u(ks[5], (h, h), bound_h),
        "out_w": u(ks[6], (h, 2 * h), bound_2h),   # torch Linear(2H, H) weight: (H, 2H)
        "out_b": u(ks[7], (h,), bound_2h),
    }


if __name__ == "__main__":
    SEQ, BATCH, HIDDEN = 8, 2, 32

    key = jax.random.PRNGKey(0)
    k_t, k_d, k_p = jax.random.split(key, 3)
    inputs_t = jax.random.normal(k_t, (SEQ, BATCH, HIDDEN), jnp.float32)
    inputs_d = jax.random.normal(k_d, (SEQ, BATCH, HIDDEN), jnp.float32)
    params = init_params(k_p, HIDDEN)

    ref = cross_attention_reference(inputs_t, inputs_d, params)

    # f32 compute path (tolerance covers the EUP approximate reciprocal in softmax).
    out_f32 = jax.block_until_ready(cross_attention_pallas(inputs_t, inputs_d, params))
    assert out_f32.shape == (SEQ, BATCH, HIDDEN)
    assert jnp.allclose(out_f32, ref, atol=1e-2, rtol=1e-2), "f32 kernel mismatch"

    # bf16 MXU path (f32 accumulation / f32 softmax); looser tolerance per bf16 operands.
    out_bf16 = jax.block_until_ready(
        cross_attention_pallas(inputs_t, inputs_d, params, compute_dtype=jnp.bfloat16))
    assert jnp.allclose(out_bf16, ref, atol=5e-2, rtol=5e-2), "bf16 kernel mismatch"

    print("KERNEL_OK")
</pallas_src>

<mosaic_0001>
module attributes {stable_mosaic.version = 11 : i64} {
  func.func @_cross_attention_kernel(%arg0: i32, %arg1: memref<1x8x32xf32, #tpu.memory_space<vmem>>, %arg2: memref<1x8x32xf32, #tpu.memory_space<vmem>>, %arg3: memref<32x96xf32, #tpu.memory_space<vmem>>, %arg4: memref<32x96xf32, #tpu.memory_space<vmem>>, %arg5: memref<32x32xf32, #tpu.memory_space<vmem>>, %arg6: memref<32x32xf32, #tpu.memory_space<vmem>>, %arg7: memref<1x32xf32, #tpu.memory_space<vmem>>, %arg8: memref<1x8x32xf32, #tpu.memory_space<vmem>>) attributes {dimension_semantics = [#tpu.dimension_semantics<parallel>], iteration_bounds = array<i64: 2>, scalar_prefetch = 0 : i64, scratch_operands = 0 : i64, tpu.core_type = #tpu.core_type<tc>, window_params = [{transform_indices = @transform_0, window_bounds = array<i64: 1, 8, 32>}, {transform_indices = @transform_1, window_bounds = array<i64: 1, 8, 32>}, {pipeline_mode = #tpu.pipeline_mode<synchronous>, transform_indices = @transform_2, window_bounds = array<i64: 32, 96>}, {pipeline_mode = #tpu.pipeline_mode<synchronous>, transform_indices = @transform_3, window_bounds = array<i64: 32, 96>}, {pipeline_mode = #tpu.pipeline_mode<synchronous>, transform_indices = @transform_4, window_bounds = array<i64: 32, 32>}, {pipeline_mode = #tpu.pipeline_mode<synchronous>, transform_indices = @transform_5, window_bounds = array<i64: 32, 32>}, {pipeline_mode = #tpu.pipeline_mode<synchronous>, transform_indices = @transform_6, window_bounds = array<i64: 1, 32>}, {transform_indices = @transform_7, window_bounds = array<i64: 1, 8, 32>}]} {
    %c0 = arith.constant 0 : index
    %c0_0 = arith.constant 0 : index
    %c0_1 = arith.constant 0 : index
    %0 = vector.load %arg1[%c0, %c0_0, %c0_1] : memref<1x8x32xf32, #tpu.memory_space<vmem>>, vector<1x8x32xf32>
    %1 = vector.shape_cast %0 : vector<1x8x32xf32> to vector<8x32xf32>
    %c0_2 = arith.constant 0 : index
    %c0_3 = arith.constant 0 : index
    %c0_4 = arith.constant 0 : index
    %2 = vector.load %arg2[%c0_2, %c0_3, %c0_4] : memref<1x8x32xf32, #tpu.memory_space<vmem>>, vector<1x8x32xf32>
    %3 = vector.shape_cast %2 : vector<1x8x32xf32> to vector<8x32xf32>
    %c0_5 = arith.constant 0 : index
    %c0_6 = arith.constant 0 : index
    %4 = vector.load %arg3[%c0_5, %c0_6] : memref<32x96xf32, #tpu.memory_space<vmem>>, vector<32x96xf32>
    %cst = arith.constant dense<0.000000e+00> : vector<8x96xf32>
    %5 = tpu.matmul %1, %4, %cst {dimension_numbers = #tpu.dot_dimension_numbers<[1], [0], [0], [1], [0, 0, 1, 1], [], []>} : vector<8x32xf32>, vector<32x96xf32>, vector<8x96xf32> -> vector<8x96xf32>
    %c0_7 = arith.constant 0 : index
    %c0_8 = arith.constant 0 : index
    %6 = vector.load %arg4[%c0_7, %c0_8] : memref<32x96xf32, #tpu.memory_space<vmem>>, vector<32x96xf32>
    %cst_9 = arith.constant dense<0.000000e+00> : vector<8x96xf32>
    %7 = tpu.matmul %3, %6, %cst_9 {dimension_numbers = #tpu.dot_dimension_numbers<[1], [0], [0], [1], [0, 0, 1, 1], [], []>} : vector<8x32xf32>, vector<32x96xf32>, vector<8x96xf32> -> vector<8x96xf32>
    %8 = vector.extract_strided_slice %5 {offsets = [0, 0], sizes = [8, 32], strides = [1, 1]} : vector<8x96xf32> to vector<8x32xf32>
    %9 = vector.shape_cast %8 : vector<8x32xf32> to vector<1x8x32xf32>
    %10 = vector.extract_strided_slice %5 {offsets = [0, 32], sizes = [8, 32], strides = [1, 1]} : vector<8x96xf32> to vector<8x32xf32>
    %11 = vector.shape_cast %10 : vector<8x32xf32> to vector<1x8x32xf32>
    %12 = vector.extract_strided_slice %5 {offsets = [0, 64], sizes = [8, 32], strides = [1, 1]} : vector<8x96xf32> to vector<8x32xf32>
    %13 = vector.shape_cast %12 : vector<8x32xf32> to vector<1x8x32xf32>
    %14 = vector.extract_strided_slice %7 {offsets = [0, 0], sizes = [8, 32], strides = [1, 1]} : vector<8x96xf32> to vector<8x32xf32>
    %15 = vector.shape_cast %14 : vector<8x32xf32> to vector<1x8x32xf32>
    %16 = vector.extract_strided_slice %7 {offsets = [0, 32], sizes = [8, 32], strides = [1, 1]} : vector<8x96xf32> to vector<8x32xf32>
    %17 = vector.shape_cast %16 : vector<8x32xf32> to vector<1x8x32xf32>
    %18 = vector.extract_strided_slice %7 {offsets = [0, 64], sizes = [8, 32], strides = [1, 1]} : vector<8x96xf32> to vector<8x32xf32>
    %19 = vector.shape_cast %18 : vector<8x32xf32> to vector<1x8x32xf32>
    "tpu.trace_start"() <{level = 10 : i32, message = "bqh,bkh->bqk"}> : () -> ()
    %cst_10 = arith.constant dense<0.000000e+00> : vector<1x8x8xf32>
    %20 = tpu.matmul %15, %11, %cst_10 {dimension_numbers = #tpu.dot_dimension_numbers<[2], [2], [1], [1], [0, 0, 0, 1, 1, 1], [0], [0]>} : vector<1x8x32xf32>, vector<1x8x32xf32>, vector<1x8x8xf32> -> vector<1x8x8xf32>
    %cst_11 = arith.constant dense<0.000000e+00> : vector<1x8x8xf32>
    %21 = tpu.matmul %9, %17, %cst_11 {dimension_numbers = #tpu.dot_dimension_numbers<[2], [2], [1], [1], [0, 0, 0, 1, 1, 1], [0], [0]>} : vector<1x8x32xf32>, vector<1x8x32xf32>, vector<1x8x8xf32> -> vector<1x8x8xf32>
    "tpu.trace_stop"() : () -> ()
    %cst_12 = arith.constant dense<0xFF800000> : vector<1x8xf32>
    %22 = vector.multi_reduction <maximumf>, %20, %cst_12 [2] : vector<1x8x8xf32> to vector<1x8xf32>
    %23 = vector.shape_cast %22 : vector<1x8xf32> to vector<1x8x1xf32>
    %24 = vector.broadcast %23 : vector<1x8x1xf32> to vector<1x8x8xf32>
    %25 = arith.subf %20, %24 : vector<1x8x8xf32>
    %26 = math.exp %25 : vector<1x8x8xf32>
    %cst_13 = arith.constant dense<0.000000e+00> : vector<1x8xf32>
    %27 = vector.multi_reduction <add>, %26, %cst_13 [2] : vector<1x8x8xf32> to vector<1x8xf32>
    %28 = vector.shape_cast %27 : vector<1x8xf32> to vector<1x8x1xf32>
    %29 = tpu.reciprocal %28 {approx = true} : vector<1x8x1xf32> -> vector<1x8x1xf32>
    %30 = vector.broadcast %29 : vector<1x8x1xf32> to vector<1x8x8xf32>
    %31 = arith.mulf %26, %30 : vector<1x8x8xf32>
    %cst_14 = arith.constant dense<0xFF800000> : vector<1x8xf32>
    %32 = vector.multi_reduction <maximumf>, %21, %cst_14 [2] : vector<1x8x8xf32> to vector<1x8xf32>
    %33 = vector.shape_cast %32 : vector<1x8xf32> to vector<1x8x1xf32>
    %34 = vector.broadcast %33 : vector<1x8x1xf32> to vector<1x8x8xf32>
    %35 = arith.subf %21, %34 : vector<1x8x8xf32>
    %36 = math.exp %35 : vector<1x8x8xf32>
    %cst_15 = arith.constant dense<0.000000e+00> : vector<1x8xf32>
    %37 = vector.multi_reduction <add>, %36, %cst_15 [2] : vector<1x8x8xf32> to vector<1x8xf32>
    %38 = vector.shape_cast %37 : vector<1x8xf32> to vector<1x8x1xf32>
    %39 = tpu.reciprocal %38 {approx = true} : vector<1x8x1xf32> -> vector<1x8x1xf32>
    %40 = vector.broadcast %39 : vector<1x8x1xf32> to vector<1x8x8xf32>
    %41 = arith.mulf %36, %40 : vector<1x8x8xf32>
    "tpu.trace_start"() <{level = 10 : i32, message = "bqk,bkh->bqh"}> : () -> ()
    %cst_16 = arith.constant dense<0.000000e+00> : vector<1x8x32xf32>
    %42 = tpu.matmul %31, %13, %cst_16 {dimension_numbers = #tpu.dot_dimension_numbers<[2], [1], [1], [2], [0, 0, 0, 1, 1, 2], [0], [0]>} : vector<1x8x8xf32>, vector<1x8x32xf32>, vector<1x8x32xf32> -> vector<1x8x32xf32>
    %cst_17 = arith.constant dense<0.000000e+00> : vector<1x8x32xf32>
    %43 = tpu.matmul %41, %19, %cst_17 {dimension_numbers = #tpu.dot_dimension_numbers<[2], [1], [1], [2], [0, 0, 0, 1, 1, 2], [0], [0]>} : vector<1x8x8xf32>, vector<1x8x32xf32>, vector<1x8x32xf32> -> vector<1x8x32xf32>
    "tpu.trace_stop"() : () -> ()
    %44 = vector.shape_cast %42 : vector<1x8x32xf32> to vector<8x32xf32>
    %c0_18 = arith.constant 0 : index
    %c0_19 = arith.constant 0 : index
    %45 = vector.load %arg5[%c0_18, %c0_19] : memref<32x32xf32, #tpu.memory_space<vmem>>, vector<32x32xf32>
    %cst_20 = arith.constant dense<0.000000e+00> : vector<8x32xf32>
    %46 = tpu.matmul %44, %45, %cst_20 {dimension_numbers = #tpu.dot_dimension_numbers<[1], [0], [0], [1], [0, 0, 1, 1], [], []>} : vector<8x32xf32>, vector<32x32xf32>, vector<8x32xf32> -> vector<8x32xf32>
    %47 = vector.shape_cast %43 : vector<1x8x32xf32> to vector<8x32xf32>
    %c0_21 = arith.constant 0 : index
    %c0_22 = arith.constant 0 : index
    %48 = vector.load %arg6[%c0_21, %c0_22] : memref<32x32xf32, #tpu.memory_space<vmem>>, vector<32x32xf32>
    %cst_23 = arith.constant dense<0.000000e+00> : vector<8x32xf32>
    %49 = tpu.matmul %47, %48, %cst_23 {dimension_numbers = #tpu.dot_dimension_numbers<[1], [0], [0], [1], [0, 0, 1, 1], [], []>} : vector<8x32xf32>, vector<32x32xf32>, vector<8x32xf32> -> vector<8x32xf32>
    %50 = arith.addf %46, %49 : vector<8x32xf32>
    %c0_24 = arith.constant 0 : index
    %c0_25 = arith.constant 0 : index
    %51 = vector.load %arg7[%c0_24, %c0_25] : memref<1x32xf32, #tpu.memory_space<vmem>>, vector<1x32xf32>
    %52 = vector.broadcast %51 : vector<1x32xf32> to vector<8x32xf32>
    %53 = arith.addf %50, %52 : vector<8x32xf32>
    %54 = vector.shape_cast %53 : vector<8x32xf32> to vector<1x8x32xf32>
    %c0_26 = arith.constant 0 : index
    %c0_27 = arith.constant 0 : index
    %c0_28 = arith.constant 0 : index
    %55 = vector.load %arg8[%c0_26, %c0_27, %c0_28] : memref<1x8x32xf32, #tpu.memory_space<vmem>>, vector<1x8x32xf32>
    tpu.vector_store %arg8[%c0_26, %c0_27, %c0_28], %54 {strides = array<i32>} : memref<1x8x32xf32, #tpu.memory_space<vmem>>, vector<1x8x32xf32>,
    return
  }
  func.func @transform_0(%arg0: i32) -> (i32, i32, i32) {
    %c0_i32 = arith.constant 0 : i32
    %c0_i32_0 = arith.constant 0 : i32
    %c0_i32_1 = arith.constant 0 : i32
    return %arg0, %c0_i32, %c0_i32_0 : i32, i32, i32
  }
  func.func @transform_1(%arg0: i32) -> (i32, i32, i32) {
    %c0_i32 = arith.constant 0 : i32
    %c0_i32_0 = arith.constant 0 : i32
    %c0_i32_1 = arith.constant 0 : i32
    return %arg0, %c0_i32, %c0_i32_0 : i32, i32, i32
  }
  func.func @transform_2(%arg0: i32) -> (i32, i32) {
    %c0_i32 = arith.constant 0 : i32
    %c0_i32_0 = arith.constant 0 : i32
    %c0_i32_1 = arith.constant 0 : i32
    return %c0_i32, %c0_i32_0 : i32, i32
  }
  func.func @transform_3(%arg0: i32) -> (i32, i32) {
    %c0_i32 = arith.constant 0 : i32
    %c0_i32_0 = arith.constant 0 : i32
    %c0_i32_1 = arith.constant 0 : i32
    return %c0_i32, %c0_i32_0 : i32, i32
  }
  func.func @transform_4(%arg0: i32) -> (i32, i32) {
    %c0_i32 = arith.constant 0 : i32
    %c0_i32_0 = arith.constant 0 : i32
    %c0_i32_1 = arith.constant 0 : i32
    return %c0_i32, %c0_i32_0 : i32, i32
  }
  func.func @transform_5(%arg0: i32) -> (i32, i32) {
    %c0_i32 = arith.constant 0 : i32
    %c0_i32_0 = arith.constant 0 : i32
    %c0_i32_1 = arith.constant 0 : i32
    return %c0_i32, %c0_i32_0 : i32, i32
  }
  func.func @transform_6(%arg0: i32) -> (i32, i32) {
    %c0_i32 = arith.constant 0 : i32
    %c0_i32_0 = arith.constant 0 : i32
    %c0_i32_1 = arith.constant 0 : i32
    return %c0_i32, %c0_i32_0 : i32, i32
  }
  func.func @transform_7(%arg0: i32) -> (i32, i32, i32) {
    %c0_i32 = arith.constant 0 : i32
    %c0_i32_0 = arith.constant 0 : i32
    %c0_i32_1 = arith.constant 0 : i32
    return %arg0, %c0_i32, %c0_i32_0 : i32, i32, i32
  }
}

</mosaic_0001>

<bundles_post_ra>
// kernel: tpu_custom_call.1
= control target key start
LH: loop header
LB: loop body
LE: loop exit
PB: predicated region body
PF: predicated region fallthrough
CT: control target
= control target key end

     0   :  { %s2137_s0 = inlined_call_operand.hbm [shape: f32[2,8,32], index: 0, kind: input, shape index: {}]   ;;  %s2138_s1 = inlined_call_operand.hbm [shape: f32[2,8,32], index: 1, kind: input, shape index: {}]   ;;  %s2139_s2 = inlined_call_operand.hbm [shape: f32[32,96], index: 2, kind: input, shape index: {}]   ;;  %s2140_s3 = inlined_call_operand.hbm [shape: f32[32,96], index: 3, kind: input, shape index: {}]   ;;  %s2141_s4 = inlined_call_operand.hbm [shape: f32[32,32], index: 4, kind: input, shape index: {}]   ;;  %s2142_s5 = inlined_call_operand.hbm [shape: f32[32,32], index: 5, kind: input, shape index: {}]   ;;  %s2143_s6 = inlined_call_operand.vmem [shape: f32[1,32], index: 6, kind: input, shape index: {}]   ;;  %s2144_s7 = inlined_call_operand.hbm [shape: f32[2,8,32], index: 7, kind: output, shape index: {}]  }
   0x1   :  { %2149 = sst [smem:[#allocation20_spill]] %s2139_s2 }
   0x2   :  { %2150 = sst [smem:[#allocation21_spill]] %s2140_s3 }
   0x3   :  { %2151 = sst [smem:[#allocation22_spill]] %s2141_s4 }
   0x4   :  { %2152 = sst [smem:[#allocation23_spill]] %s2142_s5 }
   0x5   :  { %12 = vsyncpa [#allocation3], 0 }
   0x6   :  { %14 = vsyncpa [#allocation3 + $0x1], 0 }
   0x7   :  { %15 = vsyncpa [#allocation6], 0 }
   0x8   :  { %17 = vsyncpa [#allocation6 + $0x1], 0 }
   0x9   :  { %18 = vsyncpa [#allocation9], 0 }
   0xa   :  { %19 = vsyncpa [#allocation12], 0 }
   0xb   :  { %20 = vsyncpa [#allocation4], 0 }
   0xc   :  { %22 = vsyncpa [#allocation4 + $0x1], 0  ;;  %s1750_s24 = smov 0   ;;  %s1752_s25 = smov 0  }
   0xd   :  { %s1754_s26 = smov 0   ;;  %s1756_s27 = smov 0  }
   0xe LB: > { %s1696_s28 = smov [#allocation7]   ;;  %s1771_s30 = sadd.s32 4294967295, %s1694_s27   ;;  %s1694_s27 = sphi %s1756_s27, %s2180_s27   ;;  %s1690_s26 = sphi %s1754_s26, %s2179_s26   ;;  %s1686_s25 = sphi %s1752_s25, %s2178_s25   ;;  %s1682_s24 = sphi %s1750_s24, %s2177_s24  }
   0xf   : > { %s228_s29 = sshll.u32 %s1696_s28, 4  ;;  %p1184_p0 = scmp.ge.s32.totalorder %s1694_s27, 1  ;;  %s1776_s29 = int_to_ptr.vmem [resolvable:$true] %s228_s29 }
  0x10   : > { %p2145_p1 = scmp.eq.s32.totalorder %s1771_s30, 0  ;;  %p216_p2 = scmp.lt.s32.totalorder %s1694_s27, 3 }
  0x11   : > { %s1697_s9 = smov [#allocation8]   ;;  %s1698_s12 = smov [#allocation10]  }
  0x12   : > { %p1778_p3 = pnand %p1184_p0, %p216_p2  ;;  %s241_s10 = sshll.u32 %s1697_s9, 4  ;;  %s1791_s10 = int_to_ptr.vmem [resolvable:$true] %s241_s10 }
  0x13   : > { %s254_s13 = sshll.u32 %s1698_s12, 4  ;;  %s2155_s2 = sld [smem:[#allocation20_spill]]  ;;  %s1793_s13 = int_to_ptr.vmem [resolvable:$true] %s254_s13 }
  0x14   : > { %s2153_s8 = scalar_select %p1778_p3, 1, 0 }
  0x15   : > { %p1355_p5 = pneg %p1778_p3 }
  0x17   : > { %p1787_p6 = pnand %p1355_p5, %p2145_p1 }
  0x19   : > { %s1440_s16 = scalar_lea.hbm %s2155_s2, 512  ;;  %p1803_p8 = pneg %p1787_p6 }
  0x1a   : > { %p1441_p7 = scmp.ne.s32.totalorder %s2155_s2, %s1440_s16  ;;  %p1447_p11 = scmp.lt.u32.totalorder %s1440_s16, %s2155_s2 }
  0x1c   : > { %p1443_p9 = pnand %p1803_p8, %p1441_p7 }
  0x1e   : > { %p1444_p10 = pneg %p1443_p9 }
  0x20   : > { %p1449_p12 = pnand %p1447_p11, %p1444_p10 }
  0x22   : > { %1452 = shalt.err (!%p1449_p12)
}
  0x23   : > { %s1453_s22 = scalar_lea.vmem %s1776_s29, 512  ;;  %p1461_p5 = scmp.lt.s32.totalorder %s1776_s29, %s1776_s29 }
  0x24   : > { %p1454_p13 = scmp.ne.s32.totalorder %s1776_s29, %s1453_s22  ;;  %p1462_p4 = scmp.lt.s32.totalorder %s1453_s22, %s1453_s22 }
  0x26   : > { %p1456_p0 = pnand %p1454_p13, %p1803_p8  ;;  %p1463_p7 = por %p1462_p4, %p1461_p5 }
  0x28   : > { %p1457_p2 = pneg %p1456_p0 }
  0x2a   : > { %p1464_p9 = pnand %p1463_p7, %p1457_p2 }
  0x2c   : > { %1467 = shalt.err (!%p1464_p9)
}
  0x2d   : > { %s1699_s23 = smov 128   ;;  %s1700_s28 = smov 8  }
  0x2e   : > { %1358 = dma.hbm_to_vmem [thread:$0]  (!%p1787_p6), %s2155_s2, 512, %s1776_s29, [#allocation6], %s1699_s23, %s1699_s23, %s1700_s28  }
  0x2f   : > { %s2157_s3 = sld [smem:[#allocation21_spill]] }
  0x35   : > { %s1468_s16 = scalar_lea.hbm %s2157_s3, 512 }
  0x36   : > { %p1469_p4 = scmp.ne.s32.totalorder %s2157_s3, %s1468_s16  ;;  %p1475_p12 = scmp.lt.u32.totalorder %s1468_s16, %s2157_s3 }
  0x38   : > { %p1471_p10 = pnand %p1469_p4, %p1803_p8 }
  0x3a   : > { %p1472_p11 = pneg %p1471_p10 }
  0x3c   : > { %p1477_p13 = pnand %p1475_p12, %p1472_p11 }
  0x3e   : > { %1480 = shalt.err (!%p1477_p13)
}
  0x3f   : > { %s1481_s29 = scalar_lea.vmem %s1791_s10, 512  ;;  %p1489_p7 = scmp.lt.s32.totalorder %s1791_s10, %s1791_s10 }
  0x40   : > { %p1482_p0 = scmp.ne.s32.totalorder %s1791_s10, %s1481_s29  ;;  %p1490_p9 = scmp.lt.s32.totalorder %s1481_s29, %s1481_s29 }
  0x42   : > { %p1484_p2 = pnand %p1482_p0, %p1803_p8  ;;  %p1491_p4 = por %p1490_p9, %p1489_p7 }
  0x44   : > { %p1485_p5 = pneg %p1484_p2 }
  0x46   : > { %p1492_p10 = pnand %p1491_p4, %p1485_p5 }
  0x48   : > { %1495 = shalt.err (!%p1492_p10)
}
  0x49   : > { %1361 = dma.hbm_to_vmem [thread:$0]  (!%p1787_p6), %s2157_s3, 512, %s1791_s10, [#allocation9], %s1699_s23, %s1699_s23, %s1700_s28  }
  0x4a   : > { %s2158_s4 = sld [smem:[#allocation22_spill]] }
  0x50   : > { %s1496_s15 = scalar_lea.hbm %s2158_s4, 512 }
  0x51   : > { %p1497_p11 = scmp.ne.s32.totalorder %s2158_s4, %s1496_s15  ;;  %p1503_p0 = scmp.lt.u32.totalorder %s1496_s15, %s2158_s4 }
  0x53   : > { %p1499_p12 = pnand %p1497_p11, %p1803_p8 }
  0x55   : > { %p1500_p13 = pneg %p1499_p12 }
  0x57   : > { %p1505_p2 = pnand %p1503_p0, %p1500_p13 }
  0x59   : > { %1508 = shalt.err (!%p1505_p2)
}
  0x5a   : > { %s1509_s10 = scalar_lea.vmem %s1793_s13, 512  ;;  %p1517_p4 = scmp.lt.s32.totalorder %s1793_s13, %s1793_s13 }
  0x5b   : > { %p1510_p5 = scmp.ne.s32.totalorder %s1793_s13, %s1509_s10  ;;  %p1518_p10 = scmp.lt.s32.totalorder %s1509_s10, %s1509_s10 }
  0x5d   : > { %p1512_p7 = pnand %p1510_p5, %p1803_p8  ;;  %p1519_p11 = por %p1518_p10, %p1517_p4 }
  0x5f   : > { %p1513_p9 = pneg %p1512_p7 }
  0x61   : > { %p1520_p12 = pnand %p1519_p11, %p1513_p9 }
  0x63   : > { %1523 = shalt.err (!%p1520_p12)
}
  0x64   : > { %1364 = dma.hbm_to_vmem [thread:$0]  (!%p1787_p6), %s2158_s4, 512, %s1793_s13, [#allocation9], %s1699_s23, %s1699_s23, %s1700_s28  }
  0x65   : > { %s1701_s22 = smov [#allocation11]   ;;  %s2159_s5 = sld [smem:[#allocation23_spill]] }
  0x66   : > { %s267_s9 = sshll.u32 %s1701_s22, 4  ;;  %s268_s9 = int_to_ptr.vmem [resolvable:$true] %s267_s9 }
  0x6b   : > { %s1524_s15 = scalar_lea.hbm %s2159_s5, 512 }
  0x6c   : > { %p1525_p13 = scmp.ne.s32.totalorder %s2159_s5, %s1524_s15  ;;  %p1531_p5 = scmp.lt.u32.totalorder %s1524_s15, %s2159_s5 }
  0x6e   : > { %p1527_p0 = pnand %p1525_p13, %p1803_p8 }
  0x70   : > { %p1528_p2 = pneg %p1527_p0 }
  0x72   : > { %p1533_p7 = pnand %p1531_p5, %p1528_p2 }
  0x74   : > { %1536 = shalt.err (!%p1533_p7)
}
  0x75   : > { %s1537_s13 = scalar_lea.vmem %s268_s9, 512  ;;  %p1545_p11 = scmp.lt.s32.totalorder %s268_s9, %s268_s9 }
  0x76   : > { %p1538_p9 = scmp.ne.s32.totalorder %s268_s9, %s1537_s13  ;;  %p1546_p12 = scmp.lt.s32.totalorder %s1537_s13, %s1537_s13 }
  0x78   : > { %p1540_p4 = pnand %p1538_p9, %p1803_p8  ;;  %p1547_p1 = por %p1546_p12, %p1545_p11 }
  0x7a   : > { %p1541_p10 = pneg %p1540_p4 }
  0x7c   : > { %p1548_p3 = pnand %p1547_p1, %p1541_p10 }
  0x7e   : > { %1551 = shalt.err (!%p1548_p3)
}
  0x7f   : > { %1367 = dma.hbm_to_vmem [thread:$0]  (!%p1787_p6), %s2159_s5, 512, %s268_s9, [#allocation12], %s1699_s23, %s1699_s23, %s1700_s28  }
  0x80   : > { %s1183_s11 = sadd.s32 4294967294, %s1694_s27   ;;  %s1902_s19 = sadd.s32 1, %s1694_s27  }
  0x81   : > { %s32_s29 = ssub.s32 %s1694_s27, %s1902_s19  ;;  %s35_s22 = sadd.s32 1, %s1690_s26 }
  0x82   : > { %p33_p1 = scmp.eq.s32.totalorder %s32_s29, 0  ;;  %p42_p3 = scmp.ne.s32.totalorder %s1690_s26, %s1686_s25 }
  0x83   : > { %p43_p8 = scmp.eq.s32.totalorder %s1694_s27, 0  ;;  %p48_p13 = scmp.ne.s32.totalorder %s1686_s25, %s1682_s24 }
  0x84   : > { %s1913_s12 = scalar_select %p33_p1, %s1690_s26, %s35_s22  }
  0x85   : > { %p1915_p0 = por %p43_p8, %p42_p3  ;;  %p2161_p2 = scmp.eq.s32.totalorder %s1771_s30, 0 }
  0x86   : > { %p203_p5 = scmp.eq.s32.totalorder %s1771_s30, 1  ;;  %p209_p7 = scmp.eq.s32.totalorder %s1183_s11, 1 }
  0x87   : > { %p1921_p6 = por %p2161_p2, %p48_p13  ;;  %p1383_p9 = scmp.lt.s32.totalorder %s1694_s27, 2 }
  0x88   : > { %s284_s28 = sand.u32 1, %s1690_s26   ;;  %p1928_p4 = por %p203_p5, %p42_p3 }
  0x89   : > { %s2162_s23 = scalar_select %p1921_p6, 1, 0 }
  0x8a   : > { %s2163_s9 = scalar_select %p1928_p4, 1, 0 }
  0x8b   : > { %p1932_p10 = por %p209_p7, %p48_p13  ;;  %s1936_s16 = sshll.u32 %s284_s28, 3 }
  0x8c   : > { %s1191_s17 = sshll.u32 %s1694_s27, 7  ;;  %s288_s10 = scalar_lea.vmem [#allocation2], %s1936_s16 }
  0x8d   : > { %s2164_s15 = scalar_select %p1932_p10, 1, 0 }
  0x8e   : > { %s1942_s13 = scalar_lea.hbm %s2137_s0, %s1191_s17  ;;  %s295_s21 = sshll.u32 %s288_s10, 4  ;;  %s1945_s21 = int_to_ptr.vmem [resolvable:$true] %s295_s21 }
  0x8f   : > { %p1949_p11 = pnand %p1383_p9, %p1915_p0  ;;  %s1956_s18 = scalar_lea.hbm %s2138_s1, %s1191_s17 }
  0x90   : > { %s302_s20 = sand.u32 1, %s1694_s27   ;;  %s285_s2 = scalar_lea.sflag [#allocation3], %s284_s28 }
  0x91   : > { %s1552_s3 = scalar_lea.hbm %s1942_s13, 128  ;;  %p1554_p1 = pneg %p1949_p11 }
  0x92   : > { %p1553_p12 = scmp.ne.s32.totalorder %s1942_s13, %s1552_s3  ;;  %s1557_s4 = scalar_lea.hbm %s2137_s0, 256 }
  0x93   : > { %p1558_p13 = scmp.lt.u32.totalorder %s1942_s13, %s2137_s0  ;;  %p1559_p0 = scmp.lt.u32.totalorder %s1557_s4, %s1552_s3 }
  0x94   : > { %p1555_p3 = pnand %p1554_p1, %p1553_p12  ;;  %p1561_p5 = scmp.lt.u32.totalorder %s1552_s3, %s1942_s13 }
  0x95   : > { %p1560_p2 = por %p1559_p0, %p1558_p13 }
  0x96   : > { %p1556_p8 = pneg %p1555_p3 }
  0x97   : > { %p1562_p7 = por %p1561_p5, %p1560_p2 }
  0x99   : > { %p1563_p9 = pnand %p1562_p7, %p1556_p8 }
  0x9b   : > { %1566 = shalt.err (!%p1563_p9)
}
  0x9c   : > { %s1567_s28 = scalar_lea.vmem %s1945_s21, 128  ;;  %s1702_s17 = smov [#allocation2]  }
  0x9d   : > { %p1568_p12 = scmp.ne.s32.totalorder %s1945_s21, %s1567_s28  ;;  %s1572_s22 = sshll.u32 %s1702_s17, 4  ;;  %s1573_s22 = int_to_ptr.vmem [resolvable:$false] %s1572_s22 }
  0x9e   : > { %s1574_s5 = scalar_lea.vmem %s1573_s22, 256  ;;  %p1575_p4 = scmp.lt.s32.totalorder %s1945_s21, %s1573_s22 }
  0x9f   : > { %p1570_p3 = pnand %p1568_p12, %p1554_p1  ;;  %p1576_p13 = scmp.lt.s32.totalorder %s1574_s5, %s1567_s28 }
  0xa1   : > { %p1571_p10 = pneg %p1570_p3  ;;  %p1577_p0 = por %p1576_p13, %p1575_p4 }
  0xa3   : > { %p1578_p2 = pnand %p1577_p0, %p1571_p10 }
  0xa5   : > { %1581 = shalt.err (!%p1578_p2)
}
  0xa6   : > { %1371 = dma.hbm_to_vmem [thread:$0]  (!%p1949_p11), %s1942_s13, 128, %s1945_s21, %s285_s2  }
  0xa7   : > { %s306_s3 = scalar_lea.vmem [#allocation5], %s1936_s16  ;;  %s303_s14 = scalar_lea.sflag [#allocation6], %s302_s20 }
  0xa8   : > { %s313_s4 = sshll.u32 %s306_s3, 4  ;;  %s1582_s10 = scalar_lea.hbm %s1956_s18, 128  ;;  %s314_s4 = int_to_ptr.vmem [resolvable:$true] %s313_s4 }
  0xa9   : > { %p1583_p4 = scmp.ne.s32.totalorder %s1956_s18, %s1582_s10  ;;  %s1587_s17 = scalar_lea.hbm %s2138_s1, 256 }
  0xaa   : > { %p1588_p5 = scmp.lt.u32.totalorder %s1956_s18, %s2138_s1  ;;  %p1589_p7 = scmp.lt.u32.totalorder %s1587_s17, %s1582_s10 }
  0xab   : > { %p1585_p10 = pnand %p1583_p4, %p1554_p1  ;;  %p1591_p12 = scmp.lt.u32.totalorder %s1582_s10, %s1956_s18 }
  0xac   : > { %p1590_p9 = por %p1589_p7, %p1588_p5 }
  0xad   : > { %p1586_p8 = pneg %p1585_p10 }
  0xae   : > { %p1592_p3 = por %p1591_p12, %p1590_p9 }
  0xb0   : > { %p1593_p13 = pnand %p1592_p3, %p1586_p8 }
  0xb2   : > { %1596 = shalt.err (!%p1593_p13)
}
  0xb3   : > { %s1597_s2 = scalar_lea.vmem %s314_s4, 128  ;;  %s1703_s16 = smov [#allocation5]  }
  0xb4   : > { %p1598_p0 = scmp.ne.s32.totalorder %s314_s4, %s1597_s2  ;;  %s1602_s13 = sshll.u32 %s1703_s16, 4  ;;  %s1603_s13 = int_to_ptr.vmem [resolvable:$false] %s1602_s13 }
  0xb5   : > { %s1604_s21 = scalar_lea.vmem %s1603_s13, 256  ;;  %p1605_p10 = scmp.lt.s32.totalorder %s314_s4, %s1603_s13 }
  0xb6   : > { %p1600_p2 = pnand %p1598_p0, %p1554_p1  ;;  %p1606_p6 = scmp.lt.s32.totalorder %s1604_s21, %s1597_s2 }
  0xb8   : > { %p1601_p4 = pneg %p1600_p2  ;;  %p1607_p5 = por %p1606_p6, %p1605_p10 }
  0xba   : > { %p1608_p7 = pnand %p1607_p5, %p1601_p4 }
  0xbc   : > { %1611 = shalt.err (!%p1608_p7)
}
  0xbd   : > { %1374 = dma.hbm_to_vmem [thread:$0]  (!%p1949_p11), %s1956_s18, 128, %s314_s4, %s303_s14  }
  0xbe   : > { %p2166_p8 = scmp.ne.s32.totalorder %s2153_s8, 0 }
  0xbf   : > { %s2009_s20 = sand.u32 (!%p2166_p8), 1, %s1686_s25   ;;  %p2167_p6 = scmp.ne.s32.totalorder (!%p2166_p8), %s2162_s23, 0 }
  0xc0   : > { %322 = sbr.rel (%p2166_p8) target bundleno = 1526 (0x5f6), region = 48  ;;  %s2012_s3 = sshll.u32 (!%p2166_p8), %s2009_s20, 3 }
  0xc1   : > { %s325_s10 = scalar_lea.sflag (!%p2166_p8), [#allocation3], %s2009_s20  ;;  %s328_s29 = scalar_lea.vmem (!%p2166_p8), [#allocation2], %s2012_s3 }
  0xc7   : > { %1657 = dma.done.wait (%p2167_p6), %s325_s10, 128  }
  0xc8   : > { %1659 = vsyncadd (%p2167_p6), %s325_s10, 4294967168  ;;  %s333_s8 = sand.u32 1, %s1771_s30   ;;  %s337_s18 = scalar_lea.vmem [#allocation5], %s2012_s3 }
  0xc9   : > { %s334_s11 = scalar_lea.sflag [#allocation6], %s333_s8 }
  0xca   : > { %1661 = dma.done.wait (%p2167_p6), %s334_s11, 128  }
  0xcb   : > { %1663 = vsyncadd (%p2167_p6), %s334_s11, 4294967168  ;;  %p2168_p11 = scmp.eq.s32.totalorder %s1771_s30, 0 }
  0xcd   : > { %1665 = dma.done.wait (%p2168_p11), [#allocation6], 512   ;;  %p2169_p1 = pmov %p2168_p11 }
  0xcf   : > { %1667 = vsyncadd (%p2169_p1), [#allocation6], 4294966784  ;;  %p2170_p9 = pmov %p2169_p1 }
  0xd0   : > { %p2171_p12 = pmov %p2169_p1 }
  0xd1   : > { %1669 = dma.done.wait (%p2170_p9), [#allocation9], 1024  }
  0xd2   : > { %1671 = vsyncadd (%p2171_p12), [#allocation9], 4294966272  ;;  %p2172_p3 = pmov %p2169_p1 }
  0xd3   : > { %p2173_p13 = pmov %p2169_p1 }
  0xd4   : > { %1673 = dma.done.wait (%p2172_p3), [#allocation12], 512  }
  0xd5   : > { %1675 = vsyncadd (%p2173_p13), [#allocation12], 4294966784  ;;  %v1704_v0 = vmov 0.0|0.0   ;;  %vm1705_vm0 = vmmov 0   ;;  %v1706_v1 = vmov 0.0   ;;  %v391_v2 = vld [vmem:[#allocation7] sm:$0xff] }
  0xd6   : > { %1309 = vmatprep.subr.bf16.mxu0 %v1704_v0  ;;  %1315 = vmatprep.subr.bf16.mxu1 %v1704_v0  ;;  %v392_v3 = vld [vmem:[#allocation7 + $0x8] sm:$0xff]  ;;  %v469_v4 = vld [vmem:[#allocation8] sm:$0xff]  ;;  %v393_v7 = vld [vmem:[#allocation7 + $0x10] sm:$0xff]  ;;  %vm395_vm1 = vcmask 261120   ;;  %s1707_s23 = smov 96   ;;  %vm700_vm2 = vcmask 64512  }
  0xd7   : > { %1253 = vmatprep.mubr.msk.f32.mxu0 %vm1705_vm0, %v1706_v1  ;;  %1264 = vmatprep.mubr.msk.f32.mxu1 %vm1705_vm0, %v1706_v1  ;;  %v1310_v5 = vpack.c.bf16 %v392_v3, %v391_v2  ;;  %v470_v6 = vld [vmem:[#allocation8 + $0x8] sm:$0xff]  ;;  %v394_v8 = vld [vmem:[#allocation7 + $0x18] sm:$0xff]  ;;  %v471_v10 = vld [vmem:[#allocation8 + $0x10] sm:$0xff]  ;;  %s1708_s4 = smov 64   ;;  %s1214_s17 = sshll.u32 %s1771_s30, 7 }
  0xd8   : > { %v1316_v9 = vpack.c.bf16 %v470_v6, %v469_v4  ;;  %v472_v11 = vld [vmem:[#allocation8 + $0x18] sm:$0xff]  ;;  %v1313_v12 = vpack.c.bf16 %v394_v8, %v393_v7  ;;  %v389_v14 = vld [vmem:[%s328_s29] sm:$0xff]  ;;  %v877_v52 = vld [vmem:[#allocation10 + $0x10] sm:$0xff]  ;;  %s388_s22 = scalar_lea.vmem [#allocation13], %s2012_s3  ;;  %s2092_s13 = scalar_lea.hbm %s2144_s7, %s1214_s17 }
  0xd9   : > { %1311 = vmatpush3.bf16.msra.mxu0 %v1310_v5  ;;  %v1319_v13 = vpack.c.bf16 %v472_v11, %v471_v10  ;;  %v390_v15 = vld [vmem:[%s337_s18] sm:$0xff]  ;;  %v879_v42 = vld [vmem:[#allocation11] sm:$0xff]  ;;  %v880_v43 = vld [vmem:[#allocation11 + $0x8] sm:$0xff]  ;;  %s1052_s5 = sshll.u32 %s388_s22, 4  ;;  %s1039_s21 = scalar_lea.sflag [#allocation4], %s2009_s20  ;;  %s2094_s5 = int_to_ptr.vmem [resolvable:$true] %s1052_s5 }
  0xda   : > { %1312 = vmatprep.subr.bf16.mxu0 %v1704_v0  ;;  %1317 = vmatpush3.bf16.msra.mxu1 %v1316_v9  ;;  %v1322_v45 = vpack.c.bf16 %v880_v43, %v879_v42  ;;  %v875_v47 = vld [vmem:[#allocation10] sm:$0xff]  ;;  %v876_v48 = vld [vmem:[#allocation10 + $0x8] sm:$0xff]  ;;  %v878_v53 = vld [vmem:[#allocation10 + $0x18] sm:$0xff]  ;;  %s1612_s10 = scalar_lea.vmem %s2094_s5, 128  ;;  %p2174_p2 = scmp.ne.s32.totalorder %s2163_s9, 0 }
  0xdb   : > { %1318 = vmatprep.subr.bf16.mxu1 %v1704_v0  ;;  %v1328_v50 = vpack.c.bf16 %v876_v48, %v875_v47  ;;  %v1331_v54 = vpack.c.bf16 %v878_v53, %v877_v52  ;;  %v881_v55 = vld [vmem:[#allocation11 + $0x10] sm:$0xff]  ;;  %v882_v56 = vld [vmem:[#allocation11 + $0x18] sm:$0xff]  ;;  %p1613_p0 = scmp.ne.s32.totalorder %s2094_s5, %s1612_s10  ;;  %s1709_s30 = smov [#allocation13]  }
  0xdc   : > { %v1325_v57 = vpack.c.bf16 %v882_v56, %v881_v55  ;;  %s1616_s3 = sshll.u32 %s1709_s30, 4  ;;  %s1617_s3 = int_to_ptr.vmem [resolvable:$false] %s1616_s3 }
  0xdd   : > { %1314 = vmatpush3.bf16.msra.mxu0 %v1313_v12  ;;  %p1614_p4 = pnand %p1613_p0, %p2174_p2  ;;  %s1618_s29 = scalar_lea.vmem %s1617_s3, 256 }
  0xde   : > { %1320 = vmatpush3.bf16.msra.mxu1 %v1319_v13  ;;  %1267 = vmatprep.subr.mxu0 %v1706_v1  ;;  %p1619_p5 = scmp.lt.s32.totalorder %s2094_s5, %s1617_s3  ;;  %p1620_p7 = scmp.lt.s32.totalorder %s1618_s29, %s1612_s10 }
  0xdf   : > { %1272 = vmatprep.subr.mxu1 %v1706_v1  ;;  %p1615_p10 = pneg %p1614_p4 }
  0xe0   : > { %1254 = vmatmul.mubr.msk.f32.vlgmr.msra.gmra.mrb[0].mxu0 %vm395_vm1, %v389_v14  ;;  %p1621_p8 = por %p1620_p7, %p1619_p5 }
  0xe1   : > { %1265 = vmatmul.mubr.msk.f32.vlgmr.msra.gmra.mrb[0].mxu1 %vm395_vm1, %v390_v15  ;;  %1269 = vmatprep.mubr.msk.f32.mxu0 %vm1705_vm0, %v1706_v1 }
  0xe2   : > { %1274 = vmatprep.mubr.msk.f32.mxu1 %vm1705_vm0, %v1706_v1  ;;  %p1622_p6 = pnand %p1621_p8, %p1615_p10 }
 0x1b3   : > { %v465_v16 = vpop.f32.mrb[0].mxu0 }
 0x1b4   : > { %547 = vrot.lane.b32.xlu0 %v465_v16, %s1707_s23  ;;  %v1255_v17 = vpop.f32.mrb[1].mxu0  ;;  %v542_v18 = vpop.f32.mrb[0].mxu1 }
 0x1b5   : > { %v1266_v19 = vpop.f32.mrb[1].mxu1 }
 0x1b8   : > { %624 = vrot.lane.b32.xlu0 %v542_v18, %s1707_s23 }
 0x226   : > { %v548_v20 = vpop.permute.xlu0 %547 }
 0x227   : > { %1268 = vmatpush3.xpose.msk.msra.mxu0 %vm395_vm1, %v548_v20 }
 0x228   : > { %1277 = vmatprep.subr.mxu0 %v1706_v1 }
 0x22a   : > { %1270 = vmatmul.mubr.msk.f32.vlgmr.msra.gmra.mrb[2].mxu0 %vm395_vm1, %v542_v18  ;;  %v625_v21 = vpop.permute.xlu0 %624 }
 0x22b   : > { %1273 = vmatpush3.xpose.msk.msra.mxu1 %vm395_vm1, %v625_v21  ;;  %1279 = vmatprep.mubr.msk.f32.mxu0 %vm1705_vm0, %v1706_v1 }
 0x22c   : > { %1282 = vmatprep.subr.mxu1 %v1706_v1 }
 0x22e   : > { %1275 = vmatmul.mubr.msk.f32.vlgmr.msra.gmra.mrb[2].mxu1 %vm395_vm1, %v465_v16 }
 0x22f   : > { %1284 = vmatprep.mubr.msk.f32.mxu1 %vm1705_vm0, %v1706_v1 }
 0x2fd   : > { %v620_v22 = vpop.f32.mrb[2].mxu0 }
 0x2fe   : > { %v1271_v23 = vpop.f32.mrb[3].mxu0  ;;  %v701_v24 = vsel %vm700_vm2, %v620_v22, -inf }
 0x2ff   : > { %702 = vmax.xlane.f32.xlu1 %v701_v24 }
 0x301   : > { %v696_v25 = vpop.f32.mrb[2].mxu1 }
 0x302   : > { %v1276_v26 = vpop.f32.mrb[3].mxu1  ;;  %v712_v27 = vsel %vm700_vm2, %v696_v25, -inf }
 0x303   : > { %713 = vmax.xlane.f32.xlu1 %v712_v27 }
 0x314   : > { %723 = vrot.lane.b32.xlu1 %v465_v16, %s1708_s4 }
 0x38c   : > { %v703_v28 = vpop.xlane.xlu1 %702 }
 0x38d   : > { %v704_v29 = vsub.f32 %v620_v22, %v703_v28 }
 0x38f   : > { %v705_v30 = vmul.f32 1.442695, %v704_v29 }
 0x390   : > { %v714_v31 = vpop.xlane.xlu1 %713 }
 0x391   : > { %1432 = vpow2.f32 %v705_v30  ;;  %v715_v32 = vsub.f32 %v696_v25, %v714_v31 }
 0x393   : > { %v716_v33 = vmul.f32 1.442695, %v715_v32 }
 0x394   : > { %v724_v34 = vpop.permute.xlu1 %723 }
 0x395   : > { %1434 = vpow2.f32 %v716_v33  ;;  %1278 = vmatpush3.msra.mxu0 %v724_v34 }
 0x396   : > { %1321 = vmatprep.subr.bf16.mxu0 %v1704_v0 }
 0x39b   : > { %v1433_v35 = vpop.eup %1432 }
 0x39c   : > { %v707_v36 = vsel %vm700_vm2, %v1433_v35, 0.0 }
 0x39d   : > { %708 = vadd.xlane.f32.xlu0 %v707_v36 }
 0x39f   : > { %v1435_v37 = vpop.eup %1434 }
 0x3a0   : > { %v718_v38 = vsel %vm700_vm2, %v1435_v37, 0.0 }
 0x3a1   : > { %719 = vadd.xlane.f32.xlu1 %v718_v38 }
 0x3b2   : > { %799 = vrot.lane.b32.xlu1 %v542_v18, %s1708_s4 }
 0x42a   : > { %v709_v39 = vpop.xlane.xlu0 %708 }
 0x42b   : > { %1436 = vrcp.f32 %v709_v39 }
 0x42e   : > { %v720_v40 = vpop.xlane.xlu1 %719 }
 0x42f   : > { %1438 = vrcp.f32 %v720_v40 }
 0x432   : > { %v800_v41 = vpop.permute.xlu1 %799 }
 0x433   : > { %1283 = vmatpush3.msra.mxu1 %v800_v41 }
 0x434   : > { %1327 = vmatprep.subr.bf16.mxu1 %v1704_v0 }
 0x435   : > { %v1437_v44 = vpop.eup %1436 }
 0x436   : > { %v711_v46 = vmul.f32 %v1437_v44, %v1433_v35 }
 0x438   : > { %1280 = vmatmul.mubr.msk.f32.vlgmr.msra.gmra.mrb[4].mxu0 %vm700_vm2, %v711_v46 }
 0x439   : > { %v1439_v49 = vpop.eup %1438  ;;  %1323 = vmatpush3.bf16.msra.mxu0 %v1322_v45  ;;  %1295 = vmatprep.mubr.msk.f32.mxu0 %vm1705_vm0, %v1706_v1 }
 0x43a   : > { %v722_v51 = vmul.f32 %v1439_v49, %v1435_v37  ;;  %1324 = vmatprep.subr.bf16.mxu0 %v1704_v0 }
 0x43c   : > { %1285 = vmatmul.mubr.msk.f32.vlgmr.msra.gmra.mrb[4].mxu1 %vm700_vm2, %v722_v51 }
 0x43d   : > { %1329 = vmatpush3.bf16.msra.mxu1 %v1328_v50  ;;  %1306 = vmatprep.mubr.msk.f32.mxu1 %vm1705_vm0, %v1706_v1  ;;  %v1212_v1 = vld [vmem:[%s2143_s6] ss:$0 sm:$0xff] }
 0x43e   : > { %1330 = vmatprep.subr.bf16.mxu1 %v1704_v0  ;;  %1326 = vmatpush3.bf16.msra.mxu0 %v1325_v57 }
 0x441   : > { %1332 = vmatpush3.bf16.msra.mxu1 %v1331_v54 }
 0x50b   : > { %v795_v58 = vpop.f32.mrb[4].mxu0 }
 0x50c   : > { %v1281_v59 = vpop.f32.mrb[5].mxu0  ;;  %1307 = vmatmul.mubr.msk.f32.vlgmr.msra.gmra.mrb[6].mxu1 %vm395_vm1, %v795_v58 }
 0x50f   : > { %v871_v60 = vpop.f32.mrb[4].mxu1 }
 0x510   : > { %v1286_v61 = vpop.f32.mrb[5].mxu1  ;;  %1296 = vmatmul.mubr.msk.f32.vlgmr.msra.gmra.mrb[6].mxu0 %vm395_vm1, %v871_v60 }
 0x5df   : > { %v1025_v62 = vpop.f32.mrb[6].mxu1 }
 0x5e0   : > { %v1308_v63 = vpop.f32.mrb[7].mxu1 }
 0x5e3   : > { %v952_v0 = vpop.f32.mrb[6].mxu0 }
 0x5e4   : > { %v1026_v2 = vadd.f32 %v1025_v62, %v952_v0  ;;  %v1297_v3 = vpop.f32.mrb[7].mxu0 }
 0x5e6   : > { %v1036_v4 = vadd.f32 %v1212_v1, %v1026_v2 }
 0x5e8   : > { %1037 = vst.msk [vmem:[%s388_s22] sm:$0xff] %vm395_vm1, %v1036_v4 }
 0x5e9   : > { %1625 = shalt.err (!%p1622_p6)
}
 0x5ea   : > { %s1626_s20 = scalar_lea.hbm %s2092_s13, 128  ;;  %s1630_s18 = scalar_lea.hbm %s2144_s7, 256 }
 0x5eb   : > { %p1627_p11 = scmp.ne.s32.totalorder %s2092_s13, %s1626_s20  ;;  %p1631_p12 = scmp.lt.u32.totalorder %s2092_s13, %s2144_s7 }
 0x5ec   : > { %p1632_p3 = scmp.lt.u32.totalorder %s1630_s18, %s1626_s20  ;;  %p1634_p0 = scmp.lt.u32.totalorder %s1626_s20, %s2092_s13 }
 0x5ed   : > { %p1628_p1 = pnand %p1627_p11, %p2174_p2 }
 0x5ee   : > { %p1633_p13 = por %p1632_p3, %p1631_p12 }
 0x5ef   : > { %p1629_p9 = pneg %p1628_p1 }
 0x5f0   : > { %p1635_p4 = por %p1634_p0, %p1633_p13 }
 0x5f2   : > { %p1636_p10 = pnand %p1635_p4, %p1629_p9 }
 0x5f4   : > { %1639 = shalt.err (!%p1636_p10)
}
 0x5f5   : > { %1353 = dma.vmem_to_hbm [thread:$0]  (%p2174_p2), %s2094_s5, 128, %s2092_s13, %s1039_s21  }
 0x5f6 PF: > { %s1064_s14 = sand.u32 1, %s1682_s24   ;;  %p2175_p5 = scmp.ne.s32.totalorder %s2164_s15, 0 }
 0x5f7   : > { %p2176_p7 = scmp.ge.s32.totalorder %s1694_s27, 2  ;;  %s1065_s28 = scalar_lea.sflag [#allocation4], %s1064_s14 }
 0x5f9   : > { %p1376_p8 = pnand %p2176_p7, %p2175_p5 }
 0x5fb   : > { %1677 = dma.done.wait (!%p1376_p8), %s1065_s28, 128  }
 0x5fc   : > { %1679 = vsyncadd (!%p1376_p8), %s1065_s28, 4294967168  ;;  %p25_p6 = scmp.ge.s32.totalorder %s1902_s19, 4   ;;  %s2177_s24 = smov %s1686_s25 }
 0x5fd   : > { %s2178_s25 = smov %s1690_s26  ;;  %s2179_s26 = smov %s1913_s12 }
 0x5fe   : > { %s2180_s27 = smov %s1902_s19  ;;  %27 = sbr.rel (!%p25_p6) target bundleno = 14 (0xe), region = 122 }
 0x605   :  { %1070 = vsyncpa [#allocation3], 1 }
 0x606   :  { %1072 = vsyncpa [#allocation3 + $0x1], 1 }
 0x607   :  { %1073 = vsyncpa [#allocation6], 1 }
 0x608   :  { %1075 = vsyncpa [#allocation6 + $0x1], 1 }
 0x609   :  { %1076 = vsyncpa [#allocation9], 1 }
 0x60a   :  { %1077 = vsyncpa [#allocation12], 1 }
 0x60b   :  { %1078 = vsyncpa [#allocation4], 1 }
 0x60c   :  { %1080 = vsyncpa [#allocation4 + $0x1], 1 }

</bundles_post_ra>
